<compile_context>
chip_gen: v7x
topology: tpu7x:2x2x1
jax: 0.10.0
libtpu: 0.0.40
codegen_flags: <defaults>
</compile_context>

<pallas_src>
import functools

import numpy as np
import jax
import jax.numpy as jnp
from jax.experimental import pallas as pl
from jax.experimental.pallas import tpu as pltpu


# ---------------------------------------------------------------------------
# Fixed matrices for adaptive average pool / bilinear (align_corners) interp
# ---------------------------------------------------------------------------
def adaptive_pool_matrix(out_size, in_size):
    """Row-stochastic matrix M (out, in): M @ v = AdaptiveAvgPool1d(v, out)."""
    M = np.zeros((out_size, in_size), dtype=np.float32)
    for i in range(out_size):
        start = (i * in_size) // out_size
        end = -(-((i + 1) * in_size) // out_size)  # ceil
        M[i, start:end] = 1.0 / (end - start)
    return M


def linear_interp_matrix(out_size, in_size):
    """Matrix L (out, in): L @ v = linear interp of v (align_corners=True)."""
    M = np.zeros((out_size, in_size), dtype=np.float32)
    if in_size == 1:
        M[:, 0] = 1.0
        return M
    if out_size == 1:
        M[0, 0] = 1.0
        return M
    scale = (in_size - 1) / (out_size - 1)
    for i in range(out_size):
        s = i * scale
        p0 = min(int(np.floor(s)), in_size - 1)
        t = s - p0
        M[i, p0] += 1.0 - t
        if p0 + 1 < in_size:
            M[i, p0 + 1] += t
    return M


@functools.lru_cache(maxsize=None)
def _pool_interp_matrices(height, width, k):
    """Cached (H*W, k*k) pooling^T and (k*k, H*W) interp^T matrices."""
    Ph = adaptive_pool_matrix(k, height)
    Pw = adaptive_pool_matrix(k, width)
    Lh = linear_interp_matrix(height, k)
    Lw = linear_interp_matrix(width, k)
    mpoolT = np.ascontiguousarray(np.kron(Ph, Pw).T)    # (HW, kk)
    minterpT = np.ascontiguousarray(np.kron(Lh, Lw).T)  # (kk, HW)
    return mpoolT, minterpT


# ---------------------------------------------------------------------------
# Pallas kernel: one grid step == one block of `batch_block` examples.
# Rows of x / out are indexed b*C + c; per-batch 1x1 convs use block-diagonal
# weights so every stage is one MXU dot over the whole batch block.
# ---------------------------------------------------------------------------
def idconv_kernel(x_ref, mpoolT_ref, w1_ref, w2_ref, wparam_ref, minterpT_ref,
                  w3a_ref, w3b_ref, out_ref, *, groups, channels, batch_block,
                  kk, vectorized_softmax):
    G, C, Bt = groups, channels, batch_block
    mm = w1_ref.dtype                       # matmul operand dtype (bf16)
    x = x_ref[...]                          # (Bt*C, HW)

    # adaptive avg pool: (Bt*C, HW) @ (HW, kk) -> (Bt*C, kk), f32 accumulation
    x_avg = jnp.dot(x, mpoolT_ref[...], preferred_element_type=jnp.float32)

    # conv1 (block-diag): (Bt*C//G, Bt*C) @ (Bt*C, kk) -> (Bt*C//G, kk)
    y1 = jnp.dot(w1_ref[...], x_avg.astype(mm),
                 preferred_element_type=jnp.float32)
    # conv2 (block-diag): (Bt*G*C, Bt*C//G) @ (Bt*C//G, kk) -> (Bt*G*C, kk)
    y2 = jnp.dot(w2_ref[...], y1.astype(mm),
                 preferred_element_type=jnp.float32)

    # ---- softmax over the group axis (all math in f32) --------------------
    wp = wparam_ref[...]                    # (G, C, kk), f32
    if vectorized_softmax:
        # Vectorized form: single max / sum reductions over the group axis.
        logits = y2.reshape(Bt, G, C, kk)
        m = jnp.max(logits, axis=1, keepdims=True)
        e = jnp.exp(logits - m)                                   # (Bt,G,C,kk)
        inv = pl.reciprocal(jnp.sum(e, axis=1), approx=True)      # (Bt,C,kk)
        w_small = jnp.sum(e * wp.reshape(1, G, C, kk), axis=1) * inv
    else:
        # Fallback: static loop over the (small) group axis, rank-3 math only.
        logits = y2.reshape(Bt, G * C, kk)
        sl = [logits[:, g * C:(g + 1) * C, :] for g in range(G)]  # (Bt,C,kk)
        m = sl[0]
        for s in sl[1:]:
            m = jnp.maximum(m, s)
        ex = [jnp.exp(s - m) for s in sl]
        denom = ex[0]
        for t in ex[1:]:
            denom = denom + t
        inv = pl.reciprocal(denom, approx=True)
        acc = ex[0] * wp[0]
        for g in range(1, G):
            acc = acc + ex[g] * wp[g]
        w_small = acc * inv                                       # (Bt,C,kk)

    w_small = w_small.reshape(Bt * C, kk)

    # bilinear upsample (align_corners=True): (Bt*C, kk) @ (kk, HW)
    w_full = jnp.dot(w_small.astype(mm), minterpT_ref[...],
                     preferred_element_type=jnp.float32)

    # conv3 over concat([shortcut, w_full]) == W3a @ x + W3b @ w_full,
    # again with block-diagonal (per-batch) weights.
    out = (jnp.dot(w3a_ref[...], x, preferred_element_type=jnp.float32)
           + jnp.dot(w3b_ref[...], w_full.astype(mm),
                     preferred_element_type=jnp.float32))
    out_ref[...] = out.astype(out_ref.dtype)


def _build_pallas_call(kernel, *, B, C, HW, kk, G, Bt, nb,
                       single_buffer_consts):
    def const_spec(shape):
        kwargs = {}
        if single_buffer_consts:
            # Grid-invariant operand: one VMEM buffer is enough (no pipelining).
            kwargs["pipeline_mode"] = pl.Buffered(1)
        return pl.BlockSpec(shape, lambda *_: (0,) * len(shape), **kwargs)

    in_specs = [
        pl.BlockSpec((Bt * C, HW), lambda b: (b, 0)),   # x (batch-blocked)
        const_spec((HW, kk)),                           # pooling matrix^T
        const_spec((Bt * (C // G), Bt * C)),            # conv1 (block-diag)
        const_spec((Bt * G * C, Bt * (C // G))),        # conv2 (block-diag)
        const_spec((G, C, kk)),                         # learnable weights
        const_spec((kk, HW)),                           # interp matrix^T
        const_spec((Bt * C, Bt * C)),                   # conv3 (shortcut part)
        const_spec((Bt * C, Bt * C)),                   # conv3 (generated part)
    ]
    return pl.pallas_call(
        kernel,
        out_shape=jax.ShapeDtypeStruct((B * C, HW), jnp.float32),
        grid=(nb,),
        in_specs=in_specs,
        out_specs=pl.BlockSpec((Bt * C, HW), lambda b: (b, 0)),
        compiler_params=pltpu.CompilerParams(
            dimension_semantics=("parallel",),
            # v5e's default scoped VMEM is only 16 MiB -> set explicitly.
            # Raise further if block sizes are grown (v6e: 128 MiB physical).
            vmem_limit_bytes=32 * 1024 * 1024,
        ),
    )


def idconv2d_pallas(x_bchw, W1, W2, W3, wparam, kernel_size, groups,
                    batch_block=None):
    B, C, H, W = x_bchw.shape
    k, G = kernel_size, groups
    HW, kk = H * W, k * k

    # Default: fuse the whole batch into one grid step (best on v5e/v6e for
    # small shapes).  On v7x pass batch_block=B//2 so both TensorCores get work.
    Bt = B if batch_block is None else int(batch_block)
    assert B % Bt == 0, "batch_block must divide the batch size"
    nb = B // Bt
    if nb > 1:
        # Partial blocks: second-to-last dim must be sublane-aligned.
        assert (Bt * C) % 8 == 0, "batch_block*channels must be a multiple of 8"

    mpoolT_np, minterpT_np = _pool_interp_matrices(H, W, k)

    mm = jnp.bfloat16                       # matmul operand dtype (f32 acc)
    x2d = x_bchw.reshape(B * C, HW).astype(mm)
    mpoolT = jnp.asarray(mpoolT_np, dtype=mm)
    minterpT = jnp.asarray(minterpT_np, dtype=mm)

    # Per-batch 1x1 convs as block-diagonal matrices (built once, tiny).
    eye = jnp.eye(Bt, dtype=jnp.float32)
    W1_bd = jnp.kron(eye, W1).astype(mm)              # (Bt*C//G, Bt*C)
    W2_bd = jnp.kron(eye, W2).astype(mm)              # (Bt*G*C, Bt*C//G)
    W3a_bd = jnp.kron(eye, W3[:, :C]).astype(mm)      # (Bt*C, Bt*C) shortcut
    W3b_bd = jnp.kron(eye, W3[:, C:]).astype(mm)      # (Bt*C, Bt*C) generated
    wparam3 = wparam.reshape(G, C, kk).astype(jnp.float32)

    args = (x2d, mpoolT, W1_bd, W2_bd, wparam3, minterpT, W3a_bd, W3b_bd)

    # Feature fallback: older Pallas versions may reject pl.Buffered(1) or the
    # rank-4 group reduction; degrade gracefully with identical semantics.
    configs = ((True, True), (True, False), (False, False))
    out2d, last_err = None, None
    for vec_softmax, single_buf in configs:
        kernel = functools.partial(
            idconv_kernel, groups=G, channels=C, batch_block=Bt, kk=kk,
            vectorized_softmax=vec_softmax)
        try:
            call = _build_pallas_call(kernel, B=B, C=C, HW=HW, kk=kk, G=G,
                                      Bt=Bt, nb=nb,
                                      single_buffer_consts=single_buf)
            out2d = jax.block_until_ready(call(*args))
            break
        except Exception as err:  # noqa: BLE001 - fall back to safer config
            last_err = err
            out2d = None
    if out2d is None:
        raise last_err

    return out2d.reshape(B, C, H, W).astype(x_bchw.dtype)


# ---------------------------------------------------------------------------
# Pure-JAX reference (mirrors the PyTorch forward exactly, f32)
# ---------------------------------------------------------------------------
def idconv2d_ref(x_bchw, W1, W2, W3, wparam, kernel_size, groups):
    B, C, H, W = x_bchw.shape
    k = kernel_size
    G = groups
    Ph = jnp.asarray(adaptive_pool_matrix(k, H))
    Pw = jnp.asarray(adaptive_pool_matrix(k, W))
    Lh = jnp.asarray(linear_interp_matrix(H, k))
    Lw = jnp.asarray(linear_interp_matrix(W, k))

    x_avg = jnp.einsum('bchw,ph,qw->bcpq', x_bchw, Ph, Pw)
    y1 = jnp.einsum('oc,bcpq->bopq', W1, x_avg)
    y2 = jnp.einsum('mo,bopq->bmpq', W2, y1)
    a_prime = y2.reshape(B, G, C, k, k)
    a_prime = jax.nn.softmax(a_prime, axis=1)
    a = a_prime * wparam[None]
    w_small = jnp.sum(a, axis=1)                                  # (B,C,k,k)
    w_full = jnp.einsum('bcpq,ip,jq->bcij', w_small, Lh, Lw)      # (B,C,H,W)
    cat = jnp.concatenate([x_bchw, w_full], axis=1)               # (B,2C,H,W)
    out = jnp.einsum('oc,bcij->boij', W3, cat)
    return out


if __name__ == "__main__":
    # small shapes consistent with the module
    B, C, H, W = 2, 8, 16, 16
    kernel_size, groups = 4, 2

    key = jax.random.PRNGKey(0)
    kx, k1, k2, k3, kw = jax.random.split(key, 5)
    x = jax.random.normal(kx, (B, C, H, W), dtype=jnp.float32)
    # conv weights ~ N(0, 0.1^2); learnable weights ~ U[0,1) (mirrors torch.rand)
    W1 = 0.1 * jax.random.normal(k1, (C // groups, C), dtype=jnp.float32)
    W2 = 0.1 * jax.random.normal(k2, (groups * C, C // groups), dtype=jnp.float32)
    W3 = 0.1 * jax.random.normal(k3, (C, 2 * C), dtype=jnp.float32)
    wparam = jax.random.uniform(kw, (groups, C, kernel_size, kernel_size),
                                dtype=jnp.float32)

    out = idconv2d_pallas(x, W1, W2, W3, wparam, kernel_size, groups)
    out = jax.block_until_ready(out)

    ref = idconv2d_ref(x, W1, W2, W3, wparam, kernel_size, groups)
    ref = jax.block_until_ready(ref)

    # Matmul operands are bf16 (f32 accumulation) -> compare at bf16 tolerance.
    np.testing.assert_allclose(np.asarray(out), np.asarray(ref),
                               rtol=2e-2, atol=2e-2)
    print("KERNEL_OK")
</pallas_src>

<mosaic_0001>
module attributes {stable_mosaic.version = 11 : i64} {
  func.func @idconv_kernel(%arg0: i32, %arg1: memref<16x256xbf16, #tpu.memory_space<vmem>>, %arg2: memref<256x16xbf16, #tpu.memory_space<vmem>>, %arg3: memref<8x16xbf16, #tpu.memory_space<vmem>>, %arg4: memref<32x8xbf16, #tpu.memory_space<vmem>>, %arg5: memref<2x8x16xf32, #tpu.memory_space<vmem>>, %arg6: memref<16x256xbf16, #tpu.memory_space<vmem>>, %arg7: memref<16x16xbf16, #tpu.memory_space<vmem>>, %arg8: memref<16x16xbf16, #tpu.memory_space<vmem>>, %arg9: memref<16x256xf32, #tpu.memory_space<vmem>>) attributes {dimension_semantics = [#tpu.dimension_semantics<parallel>], iteration_bounds = array<i64: 1>, scalar_prefetch = 0 : i64, scratch_operands = 0 : i64, tpu.core_type = #tpu.core_type<tc>, window_params = [{transform_indices = @transform_0, window_bounds = array<i64: 16, 256>}, {pipeline_mode = #tpu.pipeline_mode<synchronous>, transform_indices = @transform_1, window_bounds = array<i64: 256, 16>}, {pipeline_mode = #tpu.pipeline_mode<synchronous>, transform_indices = @transform_2, window_bounds = array<i64: 8, 16>}, {pipeline_mode = #tpu.pipeline_mode<synchronous>, transform_indices = @transform_3, window_bounds = array<i64: 32, 8>}, {pipeline_mode = #tpu.pipeline_mode<synchronous>, transform_indices = @transform_4, window_bounds = array<i64: 2, 8, 16>}, {pipeline_mode = #tpu.pipeline_mode<synchronous>, transform_indices = @transform_5, window_bounds = array<i64: 16, 256>}, {pipeline_mode = #tpu.pipeline_mode<synchronous>, transform_indices = @transform_6, window_bounds = array<i64: 16, 16>}, {pipeline_mode = #tpu.pipeline_mode<synchronous>, transform_indices = @transform_7, window_bounds = array<i64: 16, 16>}, {transform_indices = @transform_8, window_bounds = array<i64: 16, 256>}]} {
    %c0 = arith.constant 0 : index
    %c0_0 = arith.constant 0 : index
    %0 = vector.load %arg1[%c0, %c0_0] : memref<16x256xbf16, #tpu.memory_space<vmem>>, vector<16x256xbf16>
    %c0_1 = arith.constant 0 : index
    %c0_2 = arith.constant 0 : index
    %1 = vector.load %arg2[%c0_1, %c0_2] : memref<256x16xbf16, #tpu.memory_space<vmem>>, vector<256x16xbf16>
    %cst = arith.constant dense<0.000000e+00> : vector<16x16xf32>
    %2 = tpu.matmul %0, %1, %cst {dimension_numbers = #tpu.dot_dimension_numbers<[1], [0], [0], [1], [0, 0, 1, 1], [], []>} : vector<16x256xbf16>, vector<256x16xbf16>, vector<16x16xf32> -> vector<16x16xf32>
    %c0_3 = arith.constant 0 : index
    %c0_4 = arith.constant 0 : index
    %3 = vector.load %arg3[%c0_3, %c0_4] : memref<8x16xbf16, #tpu.memory_space<vmem>>, vector<8x16xbf16>
    %4 = arith.truncf %2 : vector<16x16xf32> to vector<16x16xbf16>
    %cst_5 = arith.constant dense<0.000000e+00> : vector<8x16xf32>
    %5 = tpu.matmul %3, %4, %cst_5 {dimension_numbers = #tpu.dot_dimension_numbers<[1], [0], [0], [1], [0, 0, 1, 1], [], []>} : vector<8x16xbf16>, vector<16x16xbf16>, vector<8x16xf32> -> vector<8x16xf32>
    %c0_6 = arith.constant 0 : index
    %c0_7 = arith.constant 0 : index
    %6 = vector.load %arg4[%c0_6, %c0_7] : memref<32x8xbf16, #tpu.memory_space<vmem>>, vector<32x8xbf16>
    %7 = arith.truncf %5 : vector<8x16xf32> to vector<8x16xbf16>
    %cst_8 = arith.constant dense<0.000000e+00> : vector<32x16xf32>
    %8 = tpu.matmul %6, %7, %cst_8 {dimension_numbers = #tpu.dot_dimension_numbers<[1], [0], [0], [1], [0, 0, 1, 1], [], []>} : vector<32x8xbf16>, vector<8x16xbf16>, vector<32x16xf32> -> vector<32x16xf32>
    %c0_9 = arith.constant 0 : index
    %c0_10 = arith.constant 0 : index
    %c0_11 = arith.constant 0 : index
    %9 = vector.load %arg5[%c0_9, %c0_10, %c0_11] : memref<2x8x16xf32, #tpu.memory_space<vmem>>, vector<2x8x16xf32>
    %10 = vector.shape_cast %8 : vector<32x16xf32> to vector<2x2x8x16xf32>
    %cst_12 = arith.constant dense<0xFF800000> : vector<2x8x16xf32>
    %11 = vector.multi_reduction <maximumf>, %10, %cst_12 [1] : vector<2x2x8x16xf32> to vector<2x8x16xf32>
    %12 = vector.shape_cast %11 : vector<2x8x16xf32> to vector<2x1x8x16xf32>
    %13 = vector.broadcast %12 : vector<2x1x8x16xf32> to vector<2x2x8x16xf32>
    %14 = arith.subf %10, %13 : vector<2x2x8x16xf32>
    %15 = math.exp %14 : vector<2x2x8x16xf32>
    %cst_13 = arith.constant dense<0.000000e+00> : vector<2x8x16xf32>
    %16 = vector.multi_reduction <add>, %15, %cst_13 [1] : vector<2x2x8x16xf32> to vector<2x8x16xf32>
    %17 = tpu.reciprocal %16 {approx = true} : vector<2x8x16xf32> -> vector<2x8x16xf32>
    %18 = vector.shape_cast %9 : vector<2x8x16xf32> to vector<1x2x8x16xf32>
    %19 = vector.broadcast %18 : vector<1x2x8x16xf32> to vector<2x2x8x16xf32>
    %20 = arith.mulf %15, %19 : vector<2x2x8x16xf32>
    %cst_14 = arith.constant dense<0.000000e+00> : vector<2x8x16xf32>
    %21 = vector.multi_reduction <add>, %20, %cst_14 [1] : vector<2x2x8x16xf32> to vector<2x8x16xf32>
    %22 = arith.mulf %21, %17 : vector<2x8x16xf32>
    %23 = vector.shape_cast %22 : vector<2x8x16xf32> to vector<16x16xf32>
    %24 = arith.truncf %23 : vector<16x16xf32> to vector<16x16xbf16>
    %c0_15 = arith.constant 0 : index
    %c0_16 = arith.constant 0 : index
    %25 = vector.load %arg6[%c0_15, %c0_16] : memref<16x256xbf16, #tpu.memory_space<vmem>>, vector<16x256xbf16>
    %cst_17 = arith.constant dense<0.000000e+00> : vector<16x256xf32>
    %26 = tpu.matmul %24, %25, %cst_17 {dimension_numbers = #tpu.dot_dimension_numbers<[1], [0], [0], [1], [0, 0, 1, 1], [], []>} : vector<16x16xbf16>, vector<16x256xbf16>, vector<16x256xf32> -> vector<16x256xf32>
    %c0_18 = arith.constant 0 : index
    %c0_19 = arith.constant 0 : index
    %27 = vector.load %arg7[%c0_18, %c0_19] : memref<16x16xbf16, #tpu.memory_space<vmem>>, vector<16x16xbf16>
    %cst_20 = arith.constant dense<0.000000e+00> : vector<16x256xf32>
    %28 = tpu.matmul %27, %0, %cst_20 {dimension_numbers = #tpu.dot_dimension_numbers<[1], [0], [0], [1], [0, 0, 1, 1], [], []>} : vector<16x16xbf16>, vector<16x256xbf16>, vector<16x256xf32> -> vector<16x256xf32>
    %c0_21 = arith.constant 0 : index
    %c0_22 = arith.constant 0 : index
    %29 = vector.load %arg8[%c0_21, %c0_22] : memref<16x16xbf16, #tpu.memory_space<vmem>>, vector<16x16xbf16>
    %30 = arith.truncf %26 : vector<16x256xf32> to vector<16x256xbf16>
    %cst_23 = arith.constant dense<0.000000e+00> : vector<16x256xf32>
    %31 = tpu.matmul %29, %30, %cst_23 {dimension_numbers = #tpu.dot_dimension_numbers<[1], [0], [0], [1], [0, 0, 1, 1], [], []>} : vector<16x16xbf16>, vector<16x256xbf16>, vector<16x256xf32> -> vector<16x256xf32>
    %32 = arith.addf %28, %31 : vector<16x256xf32>
    %c0_24 = arith.constant 0 : index
    %c0_25 = arith.constant 0 : index
    %33 = vector.load %arg9[%c0_24, %c0_25] : memref<16x256xf32, #tpu.memory_space<vmem>>, vector<16x256xf32>
    tpu.vector_store %arg9[%c0_24, %c0_25], %32 {strides = array<i32>} : memref<16x256xf32, #tpu.memory_space<vmem>>, vector<16x256xf32>,
    return
  }
  func.func @transform_0(%arg0: i32) -> (i32, i32) {
    %c0_i32 = arith.constant 0 : i32
    %c0_i32_0 = arith.constant 0 : i32
    return %arg0, %c0_i32 : i32, i32
  }
  func.func @transform_1(%arg0: i32) -> (i32, i32) {
    %c0_i32 = arith.constant 0 : i32
    %c0_i32_0 = arith.constant 0 : i32
    %c0_i32_1 = arith.constant 0 : i32
    return %c0_i32, %c0_i32_0 : i32, i32
  }
  func.func @transform_2(%arg0: i32) -> (i32, i32) {
    %c0_i32 = arith.constant 0 : i32
    %c0_i32_0 = arith.constant 0 : i32
    %c0_i32_1 = arith.constant 0 : i32
    return %c0_i32, %c0_i32_0 : i32, i32
  }
  func.func @transform_3(%arg0: i32) -> (i32, i32) {
    %c0_i32 = arith.constant 0 : i32
    %c0_i32_0 = arith.constant 0 : i32
    %c0_i32_1 = arith.constant 0 : i32
    return %c0_i32, %c0_i32_0 : i32, i32
  }
  func.func @transform_4(%arg0: i32) -> (i32, i32, i32) {
    %c0_i32 = arith.constant 0 : i32
    %c0_i32_0 = arith.constant 0 : i32
    %c0_i32_1 = arith.constant 0 : i32
    %c0_i32_2 = arith.constant 0 : i32
    return %c0_i32, %c0_i32_0, %c0_i32_1 : i32, i32, i32
  }
  func.func @transform_5(%arg0: i32) -> (i32, i32) {
    %c0_i32 = arith.constant 0 : i32
    %c0_i32_0 = arith.constant 0 : i32
    %c0_i32_1 = arith.constant 0 : i32
    return %c0_i32, %c0_i32_0 : i32, i32
  }
  func.func @transform_6(%arg0: i32) -> (i32, i32) {
    %c0_i32 = arith.constant 0 : i32
    %c0_i32_0 = arith.constant 0 : i32
    %c0_i32_1 = arith.constant 0 : i32
    return %c0_i32, %c0_i32_0 : i32, i32
  }
  func.func @transform_7(%arg0: i32) -> (i32, i32) {
    %c0_i32 = arith.constant 0 : i32
    %c0_i32_0 = arith.constant 0 : i32
    %c0_i32_1 = arith.constant 0 : i32
    return %c0_i32, %c0_i32_0 : i32, i32
  }
  func.func @transform_8(%arg0: i32) -> (i32, i32) {
    %c0_i32 = arith.constant 0 : i32
    %c0_i32_0 = arith.constant 0 : i32
    return %arg0, %c0_i32 : i32, i32
  }
}

module attributes {stable_mosaic.version = 11 : i64} {
  func.func @idconv_kernel(%arg0: i32, %arg1: memref<16x256xbf16, #tpu.memory_space<vmem>>, %arg2: memref<256x16xbf16, #tpu.memory_space<vmem>>, %arg3: memref<8x16xbf16, #tpu.memory_space<vmem>>, %arg4: memref<32x8xbf16, #tpu.memory_space<vmem>>, %arg5: memref<2x8x16xf32, #tpu.memory_space<vmem>>, %arg6: memref<16x256xbf16, #tpu.memory_space<vmem>>, %arg7: memref<16x16xbf16, #tpu.memory_space<vmem>>, %arg8: memref<16x16xbf16, #tpu.memory_space<vmem>>, %arg9: memref<16x256xf32, #tpu.memory_space<vmem>>) attributes {dimension_semantics = [#tpu.dimension_semantics<parallel>], iteration_bounds = array<i64: 1>, scalar_prefetch = 0 : i64, scratch_operands = 0 : i64, tpu.core_type = #tpu.core_type<tc>, window_params = [{transform_indices = @transform_0, window_bounds = array<i64: 16, 256>}, {pipeline_mode = #tpu.pipeline_mode<synchronous>, transform_indices = @transform_1, window_bounds = array<i64: 256, 16>}, {pipeline_mode = #tpu.pipeline_mode<synchronous>, transform_indices = @transform_2, window_bounds = array<i64: 8, 16>}, {pipeline_mode = #tpu.pipeline_mode<synchronous>, transform_indices = @transform_3, window_bounds = array<i64: 32, 8>}, {pipeline_mode = #tpu.pipeline_mode<synchronous>, transform_indices = @transform_4, window_bounds = array<i64: 2, 8, 16>}, {pipeline_mode = #tpu.pipeline_mode<synchronous>, transform_indices = @transform_5, window_bounds = array<i64: 16, 256>}, {pipeline_mode = #tpu.pipeline_mode<synchronous>, transform_indices = @transform_6, window_bounds = array<i64: 16, 16>}, {pipeline_mode = #tpu.pipeline_mode<synchronous>, transform_indices = @transform_7, window_bounds = array<i64: 16, 16>}, {transform_indices = @transform_8, window_bounds = array<i64: 16, 256>}]} {
    %c0 = arith.constant 0 : index
    %c0_0 = arith.constant 0 : index
    %0 = vector.load %arg1[%c0, %c0_0] : memref<16x256xbf16, #tpu.memory_space<vmem>>, vector<16x256xbf16>
    %c0_1 = arith.constant 0 : index
    %c0_2 = arith.constant 0 : index
    %1 = vector.load %arg2[%c0_1, %c0_2] : memref<256x16xbf16, #tpu.memory_space<vmem>>, vector<256x16xbf16>
    %cst = arith.constant dense<0.000000e+00> : vector<16x16xf32>
    %2 = tpu.matmul %0, %1, %cst {dimension_numbers = #tpu.dot_dimension_numbers<[1], [0], [0], [1], [0, 0, 1, 1], [], []>} : vector<16x256xbf16>, vector<256x16xbf16>, vector<16x16xf32> -> vector<16x16xf32>
    %c0_3 = arith.constant 0 : index
    %c0_4 = arith.constant 0 : index
    %3 = vector.load %arg3[%c0_3, %c0_4] : memref<8x16xbf16, #tpu.memory_space<vmem>>, vector<8x16xbf16>
    %4 = arith.truncf %2 : vector<16x16xf32> to vector<16x16xbf16>
    %cst_5 = arith.constant dense<0.000000e+00> : vector<8x16xf32>
    %5 = tpu.matmul %3, %4, %cst_5 {dimension_numbers = #tpu.dot_dimension_numbers<[1], [0], [0], [1], [0, 0, 1, 1], [], []>} : vector<8x16xbf16>, vector<16x16xbf16>, vector<8x16xf32> -> vector<8x16xf32>
    %c0_6 = arith.constant 0 : index
    %c0_7 = arith.constant 0 : index
    %6 = vector.load %arg4[%c0_6, %c0_7] : memref<32x8xbf16, #tpu.memory_space<vmem>>, vector<32x8xbf16>
    %7 = arith.truncf %5 : vector<8x16xf32> to vector<8x16xbf16>
    %cst_8 = arith.constant dense<0.000000e+00> : vector<32x16xf32>
    %8 = tpu.matmul %6, %7, %cst_8 {dimension_numbers = #tpu.dot_dimension_numbers<[1], [0], [0], [1], [0, 0, 1, 1], [], []>} : vector<32x8xbf16>, vector<8x16xbf16>, vector<32x16xf32> -> vector<32x16xf32>
    %c0_9 = arith.constant 0 : index
    %c0_10 = arith.constant 0 : index
    %c0_11 = arith.constant 0 : index
    %9 = vector.load %arg5[%c0_9, %c0_10, %c0_11] : memref<2x8x16xf32, #tpu.memory_space<vmem>>, vector<2x8x16xf32>
    %10 = vector.shape_cast %8 : vector<32x16xf32> to vector<2x2x8x16xf32>
    %cst_12 = arith.constant dense<0xFF800000> : vector<2x8x16xf32>
    %11 = vector.multi_reduction <maximumf>, %10, %cst_12 [1] : vector<2x2x8x16xf32> to vector<2x8x16xf32>
    %12 = vector.shape_cast %11 : vector<2x8x16xf32> to vector<2x1x8x16xf32>
    %13 = vector.broadcast %12 : vector<2x1x8x16xf32> to vector<2x2x8x16xf32>
    %14 = arith.subf %10, %13 : vector<2x2x8x16xf32>
    %15 = math.exp %14 : vector<2x2x8x16xf32>
    %cst_13 = arith.constant dense<0.000000e+00> : vector<2x8x16xf32>
    %16 = vector.multi_reduction <add>, %15, %cst_13 [1] : vector<2x2x8x16xf32> to vector<2x8x16xf32>
    %17 = tpu.reciprocal %16 {approx = true} : vector<2x8x16xf32> -> vector<2x8x16xf32>
    %18 = vector.shape_cast %9 : vector<2x8x16xf32> to vector<1x2x8x16xf32>
    %19 = vector.broadcast %18 : vector<1x2x8x16xf32> to vector<2x2x8x16xf32>
    %20 = arith.mulf %15, %19 : vector<2x2x8x16xf32>
    %cst_14 = arith.constant dense<0.000000e+00> : vector<2x8x16xf32>
    %21 = vector.multi_reduction <add>, %20, %cst_14 [1] : vector<2x2x8x16xf32> to vector<2x8x16xf32>
    %22 = arith.mulf %21, %17 : vector<2x8x16xf32>
    %23 = vector.shape_cast %22 : vector<2x8x16xf32> to vector<16x16xf32>
    %24 = arith.truncf %23 : vector<16x16xf32> to vector<16x16xbf16>
    %c0_15 = arith.constant 0 : index
    %c0_16 = arith.constant 0 : index
    %25 = vector.load %arg6[%c0_15, %c0_16] : memref<16x256xbf16, #tpu.memory_space<vmem>>, vector<16x256xbf16>
    %cst_17 = arith.constant dense<0.000000e+00> : vector<16x256xf32>
    %26 = tpu.matmul %24, %25, %cst_17 {dimension_numbers = #tpu.dot_dimension_numbers<[1], [0], [0], [1], [0, 0, 1, 1], [], []>} : vector<16x16xbf16>, vector<16x256xbf16>, vector<16x256xf32> -> vector<16x256xf32>
    %c0_18 = arith.constant 0 : index
    %c0_19 = arith.constant 0 : index
    %27 = vector.load %arg7[%c0_18, %c0_19] : memref<16x16xbf16, #tpu.memory_space<vmem>>, vector<16x16xbf16>
    %cst_20 = arith.constant dense<0.000000e+00> : vector<16x256xf32>
    %28 = tpu.matmul %27, %0, %cst_20 {dimension_numbers = #tpu.dot_dimension_numbers<[1], [0], [0], [1], [0, 0, 1, 1], [], []>} : vector<16x16xbf16>, vector<16x256xbf16>, vector<16x256xf32> -> vector<16x256xf32>
    %c0_21 = arith.constant 0 : index
    %c0_22 = arith.constant 0 : index
    %29 = vector.load %arg8[%c0_21, %c0_22] : memref<16x16xbf16, #tpu.memory_space<vmem>>, vector<16x16xbf16>
    %30 = arith.truncf %26 : vector<16x256xf32> to vector<16x256xbf16>
    %cst_23 = arith.constant dense<0.000000e+00> : vector<16x256xf32>
    %31 = tpu.matmul %29, %30, %cst_23 {dimension_numbers = #tpu.dot_dimension_numbers<[1], [0], [0], [1], [0, 0, 1, 1], [], []>} : vector<16x16xbf16>, vector<16x256xbf16>, vector<16x256xf32> -> vector<16x256xf32>
    %32 = arith.addf %28, %31 : vector<16x256xf32>
    %c0_24 = arith.constant 0 : index
    %c0_25 = arith.constant 0 : index
    %33 = vector.load %arg9[%c0_24, %c0_25] : memref<16x256xf32, #tpu.memory_space<vmem>>, vector<16x256xf32>
    tpu.vector_store %arg9[%c0_24, %c0_25], %32 {strides = array<i32>} : memref<16x256xf32, #tpu.memory_space<vmem>>, vector<16x256xf32>,
    return
  }
  func.func @transform_0(%arg0: i32) -> (i32, i32) {
    %c0_i32 = arith.constant 0 : i32
    %c0_i32_0 = arith.constant 0 : i32
    return %arg0, %c0_i32 : i32, i32
  }
  func.func @transform_1(%arg0: i32) -> (i32, i32) {
    %c0_i32 = arith.constant 0 : i32
    %c0_i32_0 = arith.constant 0 : i32
    %c0_i32_1 = arith.constant 0 : i32
    return %c0_i32, %c0_i32_0 : i32, i32
  }
  func.func @transform_2(%arg0: i32) -> (i32, i32) {
    %c0_i32 = arith.constant 0 : i32
    %c0_i32_0 = arith.constant 0 : i32
    %c0_i32_1 = arith.constant 0 : i32
    return %c0_i32, %c0_i32_0 : i32, i32
  }
  func.func @transform_3(%arg0: i32) -> (i32, i32) {
    %c0_i32 = arith.constant 0 : i32
    %c0_i32_0 = arith.constant 0 : i32
    %c0_i32_1 = arith.constant 0 : i32
    return %c0_i32, %c0_i32_0 : i32, i32
  }
  func.func @transform_4(%arg0: i32) -> (i32, i32, i32) {
    %c0_i32 = arith.constant 0 : i32
    %c0_i32_0 = arith.constant 0 : i32
    %c0_i32_1 = arith.constant 0 : i32
    %c0_i32_2 = arith.constant 0 : i32
    return %c0_i32, %c0_i32_0, %c0_i32_1 : i32, i32, i32
  }
  func.func @transform_5(%arg0: i32) -> (i32, i32) {
    %c0_i32 = arith.constant 0 : i32
    %c0_i32_0 = arith.constant 0 : i32
    %c0_i32_1 = arith.constant 0 : i32
    return %c0_i32, %c0_i32_0 : i32, i32
  }
  func.func @transform_6(%arg0: i32) -> (i32, i32) {
    %c0_i32 = arith.constant 0 : i32
    %c0_i32_0 = arith.constant 0 : i32
    %c0_i32_1 = arith.constant 0 : i32
    return %c0_i32, %c0_i32_0 : i32, i32
  }
  func.func @transform_7(%arg0: i32) -> (i32, i32) {
    %c0_i32 = arith.constant 0 : i32
    %c0_i32_0 = arith.constant 0 : i32
    %c0_i32_1 = arith.constant 0 : i32
    return %c0_i32, %c0_i32_0 : i32, i32
  }
  func.func @transform_8(%arg0: i32) -> (i32, i32) {
    %c0_i32 = arith.constant 0 : i32
    %c0_i32_0 = arith.constant 0 : i32
    return %arg0, %c0_i32 : i32, i32
  }
}

module attributes {stable_mosaic.version = 11 : i64} {
  func.func @idconv_kernel(%arg0: i32, %arg1: memref<16x256xbf16, #tpu.memory_space<vmem>>, %arg2: memref<256x16xbf16, #tpu.memory_space<vmem>>, %arg3: memref<8x16xbf16, #tpu.memory_space<vmem>>, %arg4: memref<32x8xbf16, #tpu.memory_space<vmem>>, %arg5: memref<2x8x16xf32, #tpu.memory_space<vmem>>, %arg6: memref<16x256xbf16, #tpu.memory_space<vmem>>, %arg7: memref<16x16xbf16, #tpu.memory_space<vmem>>, %arg8: memref<16x16xbf16, #tpu.memory_space<vmem>>, %arg9: memref<16x256xf32, #tpu.memory_space<vmem>>) attributes {dimension_semantics = [#tpu.dimension_semantics<parallel>], iteration_bounds = array<i64: 1>, scalar_prefetch = 0 : i64, scratch_operands = 0 : i64, tpu.core_type = #tpu.core_type<tc>, window_params = [{transform_indices = @transform_0, window_bounds = array<i64: 16, 256>}, {pipeline_mode = #tpu.pipeline_mode<synchronous>, transform_indices = @transform_1, window_bounds = array<i64: 256, 16>}, {pipeline_mode = #tpu.pipeline_mode<synchronous>, transform_indices = @transform_2, window_bounds = array<i64: 8, 16>}, {pipeline_mode = #tpu.pipeline_mode<synchronous>, transform_indices = @transform_3, window_bounds = array<i64: 32, 8>}, {pipeline_mode = #tpu.pipeline_mode<synchronous>, transform_indices = @transform_4, window_bounds = array<i64: 2, 8, 16>}, {pipeline_mode = #tpu.pipeline_mode<synchronous>, transform_indices = @transform_5, window_bounds = array<i64: 16, 256>}, {pipeline_mode = #tpu.pipeline_mode<synchronous>, transform_indices = @transform_6, window_bounds = array<i64: 16, 16>}, {pipeline_mode = #tpu.pipeline_mode<synchronous>, transform_indices = @transform_7, window_bounds = array<i64: 16, 16>}, {transform_indices = @transform_8, window_bounds = array<i64: 16, 256>}]} {
    %c0 = arith.constant 0 : index
    %c0_0 = arith.constant 0 : index
    %0 = vector.load %arg1[%c0, %c0_0] : memref<16x256xbf16, #tpu.memory_space<vmem>>, vector<16x256xbf16>
    %c0_1 = arith.constant 0 : index
    %c0_2 = arith.constant 0 : index
    %1 = vector.load %arg2[%c0_1, %c0_2] : memref<256x16xbf16, #tpu.memory_space<vmem>>, vector<256x16xbf16>
    %cst = arith.constant dense<0.000000e+00> : vector<16x16xf32>
    %2 = tpu.matmul %0, %1, %cst {dimension_numbers = #tpu.dot_dimension_numbers<[1], [0], [0], [1], [0, 0, 1, 1], [], []>} : vector<16x256xbf16>, vector<256x16xbf16>, vector<16x16xf32> -> vector<16x16xf32>
    %c0_3 = arith.constant 0 : index
    %c0_4 = arith.constant 0 : index
    %3 = vector.load %arg3[%c0_3, %c0_4] : memref<8x16xbf16, #tpu.memory_space<vmem>>, vector<8x16xbf16>
    %4 = arith.truncf %2 : vector<16x16xf32> to vector<16x16xbf16>
    %cst_5 = arith.constant dense<0.000000e+00> : vector<8x16xf32>
    %5 = tpu.matmul %3, %4, %cst_5 {dimension_numbers = #tpu.dot_dimension_numbers<[1], [0], [0], [1], [0, 0, 1, 1], [], []>} : vector<8x16xbf16>, vector<16x16xbf16>, vector<8x16xf32> -> vector<8x16xf32>
    %c0_6 = arith.constant 0 : index
    %c0_7 = arith.constant 0 : index
    %6 = vector.load %arg4[%c0_6, %c0_7] : memref<32x8xbf16, #tpu.memory_space<vmem>>, vector<32x8xbf16>
    %7 = arith.truncf %5 : vector<8x16xf32> to vector<8x16xbf16>
    %cst_8 = arith.constant dense<0.000000e+00> : vector<32x16xf32>
    %8 = tpu.matmul %6, %7, %cst_8 {dimension_numbers = #tpu.dot_dimension_numbers<[1], [0], [0], [1], [0, 0, 1, 1], [], []>} : vector<32x8xbf16>, vector<8x16xbf16>, vector<32x16xf32> -> vector<32x16xf32>
    %c0_9 = arith.constant 0 : index
    %c0_10 = arith.constant 0 : index
    %c0_11 = arith.constant 0 : index
    %9 = vector.load %arg5[%c0_9, %c0_10, %c0_11] : memref<2x8x16xf32, #tpu.memory_space<vmem>>, vector<2x8x16xf32>
    %10 = vector.shape_cast %8 : vector<32x16xf32> to vector<2x16x16xf32>
    %11 = vector.extract_strided_slice %10 {offsets = [0, 0, 0], sizes = [2, 8, 16], strides = [1, 1, 1]} : vector<2x16x16xf32> to vector<2x8x16xf32>
    %12 = vector.extract_strided_slice %10 {offsets = [0, 8, 0], sizes = [2, 8, 16], strides = [1, 1, 1]} : vector<2x16x16xf32> to vector<2x8x16xf32>
    %13 = arith.maximumf %11, %12 : vector<2x8x16xf32>
    %14 = arith.subf %11, %13 : vector<2x8x16xf32>
    %15 = math.exp %14 : vector<2x8x16xf32>
    %16 = arith.subf %12, %13 : vector<2x8x16xf32>
    %17 = math.exp %16 : vector<2x8x16xf32>
    %18 = arith.addf %15, %17 : vector<2x8x16xf32>
    %19 = tpu.reciprocal %18 {approx = true} : vector<2x8x16xf32> -> vector<2x8x16xf32>
    %20 = vector.extract_strided_slice %9 {offsets = [0, 0, 0], sizes = [1, 8, 16], strides = [1, 1, 1]} : vector<2x8x16xf32> to vector<1x8x16xf32>
    %21 = vector.shape_cast %20 : vector<1x8x16xf32> to vector<8x16xf32>
    %22 = vector.shape_cast %21 : vector<8x16xf32> to vector<1x8x16xf32>
    %23 = vector.broadcast %22 : vector<1x8x16xf32> to vector<2x8x16xf32>
    %24 = arith.mulf %15, %23 : vector<2x8x16xf32>
    %25 = vector.extract_strided_slice %9 {offsets = [1, 0, 0], sizes = [1, 8, 16], strides = [1, 1, 1]} : vector<2x8x16xf32> to vector<1x8x16xf32>
    %26 = vector.shape_cast %25 : vector<1x8x16xf32> to vector<8x16xf32>
    %27 = vector.shape_cast %26 : vector<8x16xf32> to vector<1x8x16xf32>
    %28 = vector.broadcast %27 : vector<1x8x16xf32> to vector<2x8x16xf32>
    %29 = arith.mulf %17, %28 : vector<2x8x16xf32>
    %30 = arith.addf %24, %29 : vector<2x8x16xf32>
    %31 = arith.mulf %30, %19 : vector<2x8x16xf32>
    %32 = vector.shape_cast %31 : vector<2x8x16xf32> to vector<16x16xf32>
    %33 = arith.truncf %32 : vector<16x16xf32> to vector<16x16xbf16>
    %c0_12 = arith.constant 0 : index
    %c0_13 = arith.constant 0 : index
    %34 = vector.load %arg6[%c0_12, %c0_13] : memref<16x256xbf16, #tpu.memory_space<vmem>>, vector<16x256xbf16>
    %cst_14 = arith.constant dense<0.000000e+00> : vector<16x256xf32>
    %35 = tpu.matmul %33, %34, %cst_14 {dimension_numbers = #tpu.dot_dimension_numbers<[1], [0], [0], [1], [0, 0, 1, 1], [], []>} : vector<16x16xbf16>, vector<16x256xbf16>, vector<16x256xf32> -> vector<16x256xf32>
    %c0_15 = arith.constant 0 : index
    %c0_16 = arith.constant 0 : index
    %36 = vector.load %arg7[%c0_15, %c0_16] : memref<16x16xbf16, #tpu.memory_space<vmem>>, vector<16x16xbf16>
    %cst_17 = arith.constant dense<0.000000e+00> : vector<16x256xf32>
    %37 = tpu.matmul %36, %0, %cst_17 {dimension_numbers = #tpu.dot_dimension_numbers<[1], [0], [0], [1], [0, 0, 1, 1], [], []>} : vector<16x16xbf16>, vector<16x256xbf16>, vector<16x256xf32> -> vector<16x256xf32>
    %c0_18 = arith.constant 0 : index
    %c0_19 = arith.constant 0 : index
    %38 = vector.load %arg8[%c0_18, %c0_19] : memref<16x16xbf16, #tpu.memory_space<vmem>>, vector<16x16xbf16>
    %39 = arith.truncf %35 : vector<16x256xf32> to vector<16x256xbf16>
    %cst_20 = arith.constant dense<0.000000e+00> : vector<16x256xf32>
    %40 = tpu.matmul %38, %39, %cst_20 {dimension_numbers = #tpu.dot_dimension_numbers<[1], [0], [0], [1], [0, 0, 1, 1], [], []>} : vector<16x16xbf16>, vector<16x256xbf16>, vector<16x256xf32> -> vector<16x256xf32>
    %41 = arith.addf %37, %40 : vector<16x256xf32>
    %c0_21 = arith.constant 0 : index
    %c0_22 = arith.constant 0 : index
    %42 = vector.load %arg9[%c0_21, %c0_22] : memref<16x256xf32, #tpu.memory_space<vmem>>, vector<16x256xf32>
    tpu.vector_store %arg9[%c0_21, %c0_22], %41 {strides = array<i32>} : memref<16x256xf32, #tpu.memory_space<vmem>>, vector<16x256xf32>,
    return
  }
  func.func @transform_0(%arg0: i32) -> (i32, i32) {
    %c0_i32 = arith.constant 0 : i32
    %c0_i32_0 = arith.constant 0 : i32
    return %arg0, %c0_i32 : i32, i32
  }
  func.func @transform_1(%arg0: i32) -> (i32, i32) {
    %c0_i32 = arith.constant 0 : i32
    %c0_i32_0 = arith.constant 0 : i32
    %c0_i32_1 = arith.constant 0 : i32
    return %c0_i32, %c0_i32_0 : i32, i32
  }
  func.func @transform_2(%arg0: i32) -> (i32, i32) {
    %c0_i32 = arith.constant 0 : i32
    %c0_i32_0 = arith.constant 0 : i32
    %c0_i32_1 = arith.constant 0 : i32
    return %c0_i32, %c0_i32_0 : i32, i32
  }
  func.func @transform_3(%arg0: i32) -> (i32, i32) {
    %c0_i32 = arith.constant 0 : i32
    %c0_i32_0 = arith.constant 0 : i32
    %c0_i32_1 = arith.constant 0 : i32
    return %c0_i32, %c0_i32_0 : i32, i32
  }
  func.func @transform_4(%arg0: i32) -> (i32, i32, i32) {
    %c0_i32 = arith.constant 0 : i32
    %c0_i32_0 = arith.constant 0 : i32
    %c0_i32_1 = arith.constant 0 : i32
    %c0_i32_2 = arith.constant 0 : i32
    return %c0_i32, %c0_i32_0, %c0_i32_1 : i32, i32, i32
  }
  func.func @transform_5(%arg0: i32) -> (i32, i32) {
    %c0_i32 = arith.constant 0 : i32
    %c0_i32_0 = arith.constant 0 : i32
    %c0_i32_1 = arith.constant 0 : i32
    return %c0_i32, %c0_i32_0 : i32, i32
  }
  func.func @transform_6(%arg0: i32) -> (i32, i32) {
    %c0_i32 = arith.constant 0 : i32
    %c0_i32_0 = arith.constant 0 : i32
    %c0_i32_1 = arith.constant 0 : i32
    return %c0_i32, %c0_i32_0 : i32, i32
  }
  func.func @transform_7(%arg0: i32) -> (i32, i32) {
    %c0_i32 = arith.constant 0 : i32
    %c0_i32_0 = arith.constant 0 : i32
    %c0_i32_1 = arith.constant 0 : i32
    return %c0_i32, %c0_i32_0 : i32, i32
  }
  func.func @transform_8(%arg0: i32) -> (i32, i32) {
    %c0_i32 = arith.constant 0 : i32
    %c0_i32_0 = arith.constant 0 : i32
    return %arg0, %c0_i32 : i32, i32
  }
}

</mosaic_0001>

<bundles_post_ra>
// kernel: tpu_custom_call.1
= control target key start
LH: loop header
LB: loop body
LE: loop exit
PB: predicated region body
PF: predicated region fallthrough
CT: control target
= control target key end

     0   :  { %s873_s0 = inlined_call_operand.vmem [shape: bf16[16,256], index: 0, kind: input, shape index: {}]   ;;  %s874_s1 = inlined_call_operand.vmem [shape: bf16[256,16], index: 1, kind: input, shape index: {}]   ;;  %s875_s2 = inlined_call_operand.vmem [shape: bf16[8,16], index: 2, kind: input, shape index: {}]   ;;  %s876_s3 = inlined_call_operand.vmem [shape: bf16[32,8], index: 3, kind: input, shape index: {}]   ;;  %s877_s4 = inlined_call_operand.vmem [shape: f32[2,8,16], index: 4, kind: input, shape index: {}]   ;;  %s878_s5 = inlined_call_operand.vmem [shape: bf16[16,256], index: 5, kind: input, shape index: {}]   ;;  %s879_s6 = inlined_call_operand.vmem [shape: bf16[16,16], index: 6, kind: input, shape index: {}]   ;;  %s880_s7 = inlined_call_operand.vmem [shape: bf16[16,16], index: 7, kind: input, shape index: {}]   ;;  %s881_s8 = inlined_call_operand.hbm [shape: f32[16,256], index: 8, kind: output, shape index: {}]  }
   0x1   :  { %v640_v0 = vld [vmem:[%s874_s1 + $0x40] sm:$0xff]   ;;  %v642_v2 = vld [vmem:[%s874_s1 + $0x48] sm:$0xff]   ;;  %v644_v4 = vld [vmem:[%s874_s1 + $0x50] sm:$0xff]  }
   0x2   :  { %v641_v1 = vld [vmem:[%s874_s1] sm:$0xff]   ;;  %590 = vmatprep.subr.bf16.mxu0 %v640_v0  ;;  %v643_v3 = vld [vmem:[%s874_s1 + $0x8] sm:$0xff]   ;;  %v645_v5 = vld [vmem:[%s874_s1 + $0x10] sm:$0xff]  }
   0x3   :  { %591 = vmatpush3.bf16.msra.mxu0 %v641_v1  ;;  %v646_v6 = vld [vmem:[%s874_s1 + $0x58] sm:$0xff]   ;;  %v648_v8 = vld [vmem:[%s874_s1 + $0x60] sm:$0xff]   ;;  %v650_v10 = vld [vmem:[%s874_s1 + $0x68] sm:$0xff]  }
   0x4   :  { %592 = vmatprep.subr.bf16.mxu0 %v642_v2  ;;  %v647_v7 = vld [vmem:[%s874_s1 + $0x18] sm:$0xff]   ;;  %v649_v9 = vld [vmem:[%s874_s1 + $0x20] sm:$0xff]   ;;  %v651_v11 = vld [vmem:[%s874_s1 + $0x28] sm:$0xff]  }
   0x5   :  { %v792_v12 = vld [vmem:[%s873_s0 + $0x4] ss:$8 sps:$4 sm:$0xff]   ;;  %v652_v13 = vld [vmem:[%s874_s1 + $0x70] sm:$0xff]  }
   0x6   :  { %203 = vmatprep.mubr.bf16.mxu0 %v792_v12 }
   0x7   :  { %593 = vmatpush3.bf16.msra.mxu0 %v643_v3 }
   0x8   :  { %594 = vmatprep.subr.bf16.mxu0 %v644_v4 }
   0xb   :  { %595 = vmatpush3.bf16.msra.mxu0 %v645_v5 }
   0xc   :  { %596 = vmatprep.subr.bf16.mxu0 %v646_v6 }
   0xf   :  { %597 = vmatpush3.bf16.msra.mxu0 %v647_v7 }
  0x10   :  { %598 = vmatprep.subr.bf16.mxu0 %v648_v8 }
  0x13   :  { %599 = vmatpush3.bf16.msra.mxu0 %v649_v9 }
  0x14   :  { %600 = vmatprep.subr.bf16.mxu0 %v650_v10 }
  0x15   :  { %13 = vsyncpa [#allocation3], 0  ;;  %v653_v14 = vld [vmem:[%s874_s1 + $0x30] sm:$0xff]   ;;  %v654_v15 = vld [vmem:[%s874_s1 + $0x78] sm:$0xff]   ;;  %v702_v18 = vmov 0.0   ;;  %vm703_vm0 = vmmov 0  }
  0x16   :  { %v655_v16 = vld [vmem:[%s874_s1 + $0x38] sm:$0xff]   ;;  %v810_v17 = vld [vmem:[%s873_s0] ss:$8 sps:$4 sm:$0xff]   ;;  %617 = vmatprep.subr.bf16.mxu1 %v702_v18  ;;  %619 = vmatprep.mubr.msk.bf16.mxu1 %vm703_vm0, %v702_v18  ;;  %vm214_vm1 = vcmask 130048   ;;  %vm273_vm2 = vcmask 64512   ;;  %vm280_vm3 = vcmask 1043456  }
  0x17   :  { %601 = vmatpush3.bf16.msra.mxu0 %v651_v11  ;;  %v212_v26 = vld [vmem:[%s875_s2] sm:$0xf]  ;;  %v660_v34 = vld [vmem:[%s876_s3 + $0x8] sm:$0xff]   ;;  %v704_v37 = vmov 0   ;;  %s705_s9 = smov [#allocation2]  }
  0x18   :  { %602 = vmatprep.subr.bf16.mxu0 %v652_v13  ;;  %v659_v27 = vld [vmem:[%s876_s3] sm:$0xff]   ;;  %v334_v57 = vld [vmem:[%s877_s4 + $0x8] sm:$0xff]  ;;  %s549_s10 = sshll.u32 %s705_s9, 4  ;;  %s550_s10 = int_to_ptr.vmem [resolvable:$true] %s549_s10 }
  0x19   :  { %v661_v35 = vld [vmem:[%s878_s5] ss:$8 sps:$4 sm:$0xff]   ;;  %v663_v36 = vld [vmem:[%s878_s5 + $0x4] ss:$8 sps:$4 sm:$0xff]   ;;  %p683_p1 = scmp.lt.s32.totalorder %s550_s10, %s550_s10 }
  0x1a   :  { %v333_v56 = vld [vmem:[%s877_s4] sm:$0xff] }
  0x1b   :  { %603 = vmatpush3.bf16.msra.mxu0 %v653_v14 }
  0x1c   :  { %604 = vmatprep.subr.bf16.mxu0 %v654_v15 }
  0x1f   :  { %605 = vmatpush3.bf16.msra.mxu0 %v655_v16 }
  0x22   :  { %204 = vmatmul.mubr.bf16.vlgmr.msra.gmra.mrb[0].mxu0 %v810_v17 }
  0xf5   :  { %v606_v19 = vpop.f32.mrb[0].mxu0 }
  0xf6   :  { %v607_v20 = vpop.f32.mrb[1].mxu0 }
  0xf7   :  { %v608_v21 = vadd.f32 %v607_v20, %v606_v19  ;;  %v609_v22 = vpop.f32.mrb[2].mxu0 }
  0xf8   :  { %v610_v23 = vpop.f32.mrb[3].mxu0 }
  0xf9   :  { %v611_v24 = vadd.f32 %v610_v23, %v609_v22 }
  0xfb   :  { %v213_v25 = vpack.c.bf16 %v611_v24, %v608_v21 }
  0xfd   :  { %618 = vmatpush3.bf16.msra.mxu1 %v213_v25 }
 0x100   :  { %620 = vmatmul.mubr.msk.bf16.vlgmr.msra.gmra.mrb[0].mxu1 %vm214_vm1, %v212_v26 }
 0x101   :  { %625 = vmatprep.mubr.msk.bf16.mxu1 %vm273_vm2, %v659_v27  ;;  %v664_v27 = vld [vmem:[%s880_s7] sm:$0xff]   ;;  %s678_s7 = scalar_lea.vmem %s550_s10, 512 }
 0x102   :  { %p679_p0 = scmp.ne.s32.totalorder %s550_s10, %s678_s7  ;;  %p684_p2 = scmp.lt.s32.totalorder %s678_s7, %s678_s7 }
 0x104   :  { %p685_p3 = por %p684_p2, %p683_p1 }
 0x106   :  { %p686_p4 = pnand %p685_p3, %p679_p0 }
 0x1d3   :  { %v252_v28 = vpop.f32.mrb[0].mxu1 }
 0x1d4   :  { %v262_v29 = vpack.c.bf16 %v252_v28, %v252_v28  ;;  %v621_v30 = vpop.f32.mrb[1].mxu1  ;;  %v665_v28 = vld [vmem:[%s879_s6] sm:$0xff]  }
 0x1d5   :  { %v255_v31 = vpop.f32.mrb[2].mxu1 }
 0x1d6   :  { %v282_v32 = vsel %vm280_vm3, %v262_v29, 0  ;;  %v622_v33 = vpop.f32.mrb[3].mxu1  ;;  %633 = vmatprep.subr.msk.bf16.mxu1 %vm280_vm3, %v262_v29 }
 0x1d7   :  { %624 = vmatpush3.bf16.msra.mxu1 %v282_v32 }
 0x1d8   :  { %389 = vmatprep.subr.bf16.mxu1 %v663_v36 }
 0x1da   :  { %626 = vmatmul.mubr.msk.bf16.vlgmr.msra.gmra.mrb[4].mxu1 %vm273_vm2, %v660_v34 }
 0x1db   :  { %421 = vmatprep.mubr.bf16.mxu1 %v704_v37  ;;  %390 = vmatpush1.bf16.msra.mxu1 %v661_v35 }
 0x2ad   :  { %v627_v38 = vpop.f32.mrb[4].mxu1 }
 0x2ae   :  { %v318_v39 = vpop.f32.mrb[5].mxu1  ;;  %v338_v41 = vsel %vm214_vm1, %v627_v38, -inf }
 0x2af   :  { %v628_v40 = vpop.f32.mrb[6].mxu1  ;;  %v335_v44 = vsel %vm214_vm1, %v318_v39, -inf }
 0x2b0   :  { %v339_v42 = vsel %vm214_vm1, %v628_v40, -inf  ;;  %v321_v43 = vpop.f32.mrb[7].mxu1 }
 0x2b1   :  { %v340_v45 = vmax.f32 %v338_v41, %v339_v42  ;;  %v336_v46 = vsel %vm214_vm1, %v321_v43, -inf }
 0x2b2   :  { %v337_v47 = vmax.f32 %v335_v44, %v336_v46 }
 0x2b3   :  { %v343_v48 = vsub.f32 %v627_v38, %v340_v45  ;;  %v344_v49 = vsub.f32 %v628_v40, %v340_v45 }
 0x2b4   :  { %v341_v50 = vsub.f32 %v318_v39, %v337_v47  ;;  %v342_v51 = vsub.f32 %v321_v43, %v337_v47 }
 0x2b5   :  { %v349_v52 = vmul.f32 1.442695, %v343_v48  ;;  %v351_v53 = vmul.f32 1.442695, %v344_v49 }
 0x2b6   :  { %v345_v54 = vmul.f32 1.442695, %v341_v50  ;;  %v347_v55 = vmul.f32 1.442695, %v342_v51 }
 0x2b7   :  { %666 = vpow2.f32 %v349_v52 }
 0x2b8   :  { %668 = vpow2.f32 %v351_v53 }
 0x2b9   :  { %670 = vpow2.f32 %v345_v54 }
 0x2ba   :  { %672 = vpow2.f32 %v347_v55 }
 0x2c1   :  { %v667_v58 = vpop.eup %666 }
 0x2c2   :  { %v669_v59 = vpop.eup %668  ;;  %v356_v60 = vsel %vm214_vm1, %v667_v58, 0.0  ;;  %v363_v61 = vmul.f32 %v667_v58, %v333_v56 }
 0x2c3   :  { %v671_v62 = vpop.eup %670  ;;  %v357_v63 = vsel %vm214_vm1, %v669_v59, 0.0  ;;  %v364_v0 = vmul.f32 %v669_v59, %v334_v57 }
 0x2c4   :  { %v673_v1 = vpop.eup %672  ;;  %v358_v2 = vadd.f32 %v357_v63, %v356_v60  ;;  %v353_v3 = vsel %vm214_vm1, %v671_v62, 0.0  ;;  %v361_v4 = vmul.f32 %v671_v62, %v333_v56  ;;  %v368_v5 = vsel %vm214_vm1, %v363_v61, 0.0 }
 0x2c5   :  { %v369_v6 = vsel %vm214_vm1, %v364_v0, 0.0  ;;  %v354_v7 = vsel %vm214_vm1, %v673_v1, 0.0  ;;  %v362_v8 = vmul.f32 %v673_v1, %v334_v57 }
 0x2c6   :  { %674 = vrcp.f32 %v358_v2  ;;  %v355_v9 = vadd.f32 %v354_v7, %v353_v3  ;;  %v365_v10 = vsel %vm214_vm1, %v361_v4, 0.0  ;;  %v370_v11 = vadd.f32 %v369_v6, %v368_v5 }
 0x2c7   :  { %v366_v13 = vsel %vm214_vm1, %v362_v8, 0.0 }
 0x2c8   :  { %676 = vrcp.f32 %v355_v9  ;;  %v367_v14 = vadd.f32 %v366_v13, %v365_v10 }
 0x2d0   :  { %v675_v15 = vpop.eup %674 }
 0x2d1   :  { %v372_v16 = vmul.f32 %v675_v15, %v370_v11 }
 0x2d2   :  { %v677_v18 = vpop.eup %676 }
 0x2d3   :  { %v371_v19 = vmul.f32 %v677_v18, %v367_v14 }
 0x2d5   :  { %v373_v20 = vpack.c.bf16 %v372_v16, %v371_v19 }
 0x2d7   :  { %585 = vmatmul.mubr.msk.bf16.vlgmr.msra.gmra.mrb[8].mxu1 %vm214_vm1, %v373_v20 }
 0x2d8   :  { %478 = vmatprep.mubr.bf16.mxu1 %v704_v37 }
 0x3aa   :  { %v423_v21 = vpop.f32.mrb[8].mxu1 }
 0x3ab   :  { %v425_v22 = vpop.f32.mrb[9].mxu1 }
 0x3ac   :  { %v427_v23 = vpop.f32.mrb[10].mxu1 }
 0x3ad   :  { %v436_v24 = vpack.c.bf16 %v427_v23, %v423_v21  ;;  %v429_v25 = vpop.f32.mrb[11].mxu1 }
 0x3ae   :  { %v437_v26 = vpack.c.bf16 %v429_v25, %v425_v22 }
 0x3b0   :  { %446 = vmatprep.subr.bf16.mxu1 %v437_v26 }
 0x3b1   :  { %447 = vmatpush1.bf16.msra.mxu1 %v436_v24 }
 0x3b2   :  { %497 = vmatprep.subr.bf16.mxu1 %v792_v12 }
 0x3b4   :  { %587 = vmatmul.mubr.msk.bf16.vlgmr.msra.gmra.mrb[12].mxu1 %vm214_vm1, %v664_v27 }
 0x3b5   :  { %498 = vmatpush1.bf16.msra.mxu1 %v810_v17  ;;  %529 = vmatprep.mubr.bf16.mxu1 %v704_v37 }
 0x3c0   :  { %589 = vmatmul.mubr.msk.bf16.vlgmr.msra.gmra.mrb[12].mxu1 %vm214_vm1, %v665_v28 }
 0x493   :  { %v531_v29 = vpop.f32.mrb[12].mxu1 }
 0x494   :  { %540 = vst [vmem:[#allocation2] sm:$0xff] %v531_v29  ;;  %v533_v30 = vpop.f32.mrb[13].mxu1 }
 0x495   :  { %541 = vst [vmem:[#allocation2 + $0x8] sm:$0xff] %v533_v30  ;;  %v535_v12 = vpop.f32.mrb[14].mxu1 }
 0x496   :  { %542 = vst [vmem:[#allocation2 + $0x10] sm:$0xff] %v535_v12  ;;  %v537_v31 = vpop.f32.mrb[15].mxu1 }
 0x497   :  { %543 = vst [vmem:[#allocation2 + $0x18] sm:$0xff] %v537_v31 }
 0x498   :  { %689 = shalt.err (!%p686_p4)
}
 0x499   :  { %s690_s12 = scalar_lea.hbm %s881_s8, 512 }
 0x49a   :  { %p691_p5 = scmp.ne.s32.totalorder %s881_s8, %s690_s12  ;;  %p694_p6 = scmp.lt.u32.totalorder %s690_s12, %s881_s8 }
 0x49c   :  { %p696_p7 = pnand %p694_p6, %p691_p5 }
 0x49e   :  { %699 = shalt.err (!%p696_p7)
}
 0x49f   :  { %s706_s17 = smov 256   ;;  %s707_s18 = smov 16  }
 0x4a0   :  { %555 = dma.vmem_to_hbm [thread:$0]  %s550_s10, 512, %s881_s8, [#allocation3], %s706_s17, %s706_s17, %s707_s18  }
 0x4a1   :  { %700 = dma.done.wait [#allocation3], 512  }
 0x4a2   :  { %701 = vsyncadd [#allocation3], 4294966784 }
 0x4a3   :  { %559 = vsyncpa [#allocation3], 1 }

// kernel: tpu_custom_call.1
= control target key start
LH: loop header
LB: loop body
LE: loop exit
PB: predicated region body
PF: predicated region fallthrough
CT: control target
= control target key end

     0   :  { %s873_s0 = inlined_call_operand.vmem [shape: bf16[16,256], index: 0, kind: input, shape index: {}]   ;;  %s874_s1 = inlined_call_operand.vmem [shape: bf16[256,16], index: 1, kind: input, shape index: {}]   ;;  %s875_s2 = inlined_call_operand.vmem [shape: bf16[8,16], index: 2, kind: input, shape index: {}]   ;;  %s876_s3 = inlined_call_operand.vmem [shape: bf16[32,8], index: 3, kind: input, shape index: {}]   ;;  %s877_s4 = inlined_call_operand.vmem [shape: f32[2,8,16], index: 4, kind: input, shape index: {}]   ;;  %s878_s5 = inlined_call_operand.vmem [shape: bf16[16,256], index: 5, kind: input, shape index: {}]   ;;  %s879_s6 = inlined_call_operand.vmem [shape: bf16[16,16], index: 6, kind: input, shape index: {}]   ;;  %s880_s7 = inlined_call_operand.vmem [shape: bf16[16,16], index: 7, kind: input, shape index: {}]   ;;  %s881_s8 = inlined_call_operand.hbm [shape: f32[16,256], index: 8, kind: output, shape index: {}]  }
   0x1   :  { %v640_v0 = vld [vmem:[%s874_s1 + $0x40] sm:$0xff]   ;;  %v642_v2 = vld [vmem:[%s874_s1 + $0x48] sm:$0xff]   ;;  %v644_v4 = vld [vmem:[%s874_s1 + $0x50] sm:$0xff]  }
   0x2   :  { %v641_v1 = vld [vmem:[%s874_s1] sm:$0xff]   ;;  %590 = vmatprep.subr.bf16.mxu0 %v640_v0  ;;  %v643_v3 = vld [vmem:[%s874_s1 + $0x8] sm:$0xff]   ;;  %v645_v5 = vld [vmem:[%s874_s1 + $0x10] sm:$0xff]  }
   0x3   :  { %591 = vmatpush3.bf16.msra.mxu0 %v641_v1  ;;  %v646_v6 = vld [vmem:[%s874_s1 + $0x58] sm:$0xff]   ;;  %v648_v8 = vld [vmem:[%s874_s1 + $0x60] sm:$0xff]   ;;  %v650_v10 = vld [vmem:[%s874_s1 + $0x68] sm:$0xff]  }
   0x4   :  { %592 = vmatprep.subr.bf16.mxu0 %v642_v2  ;;  %v647_v7 = vld [vmem:[%s874_s1 + $0x18] sm:$0xff]   ;;  %v649_v9 = vld [vmem:[%s874_s1 + $0x20] sm:$0xff]   ;;  %v651_v11 = vld [vmem:[%s874_s1 + $0x28] sm:$0xff]  }
   0x5   :  { %v792_v12 = vld [vmem:[%s873_s0 + $0x4] ss:$8 sps:$4 sm:$0xff]   ;;  %v652_v13 = vld [vmem:[%s874_s1 + $0x70] sm:$0xff]  }
   0x6   :  { %203 = vmatprep.mubr.bf16.mxu0 %v792_v12 }
   0x7   :  { %593 = vmatpush3.bf16.msra.mxu0 %v643_v3 }
   0x8   :  { %594 = vmatprep.subr.bf16.mxu0 %v644_v4 }
   0xb   :  { %595 = vmatpush3.bf16.msra.mxu0 %v645_v5 }
   0xc   :  { %596 = vmatprep.subr.bf16.mxu0 %v646_v6 }
   0xf   :  { %597 = vmatpush3.bf16.msra.mxu0 %v647_v7 }
  0x10   :  { %598 = vmatprep.subr.bf16.mxu0 %v648_v8 }
  0x13   :  { %599 = vmatpush3.bf16.msra.mxu0 %v649_v9 }
  0x14   :  { %600 = vmatprep.subr.bf16.mxu0 %v650_v10 }
  0x15   :  { %13 = vsyncpa [#allocation3], 0  ;;  %v653_v14 = vld [vmem:[%s874_s1 + $0x30] sm:$0xff]   ;;  %v654_v15 = vld [vmem:[%s874_s1 + $0x78] sm:$0xff]   ;;  %v702_v18 = vmov 0.0   ;;  %vm703_vm0 = vmmov 0  }
  0x16   :  { %v655_v16 = vld [vmem:[%s874_s1 + $0x38] sm:$0xff]   ;;  %v810_v17 = vld [vmem:[%s873_s0] ss:$8 sps:$4 sm:$0xff]   ;;  %617 = vmatprep.subr.bf16.mxu1 %v702_v18  ;;  %619 = vmatprep.mubr.msk.bf16.mxu1 %vm703_vm0, %v702_v18  ;;  %vm214_vm1 = vcmask 130048   ;;  %vm273_vm2 = vcmask 64512   ;;  %vm280_vm3 = vcmask 1043456  }
  0x17   :  { %601 = vmatpush3.bf16.msra.mxu0 %v651_v11  ;;  %v212_v26 = vld [vmem:[%s875_s2] sm:$0xf]  ;;  %v660_v34 = vld [vmem:[%s876_s3 + $0x8] sm:$0xff]   ;;  %v704_v37 = vmov 0   ;;  %s705_s9 = smov [#allocation2]  }
  0x18   :  { %602 = vmatprep.subr.bf16.mxu0 %v652_v13  ;;  %v659_v27 = vld [vmem:[%s876_s3] sm:$0xff]   ;;  %v334_v57 = vld [vmem:[%s877_s4 + $0x8] sm:$0xff]  ;;  %s549_s10 = sshll.u32 %s705_s9, 4  ;;  %s550_s10 = int_to_ptr.vmem [resolvable:$true] %s549_s10 }
  0x19   :  { %v661_v35 = vld [vmem:[%s878_s5] ss:$8 sps:$4 sm:$0xff]   ;;  %v663_v36 = vld [vmem:[%s878_s5 + $0x4] ss:$8 sps:$4 sm:$0xff]   ;;  %p683_p1 = scmp.lt.s32.totalorder %s550_s10, %s550_s10 }
  0x1a   :  { %v333_v56 = vld [vmem:[%s877_s4] sm:$0xff] }
  0x1b   :  { %603 = vmatpush3.bf16.msra.mxu0 %v653_v14 }
  0x1c   :  { %604 = vmatprep.subr.bf16.mxu0 %v654_v15 }
  0x1f   :  { %605 = vmatpush3.bf16.msra.mxu0 %v655_v16 }
  0x22   :  { %204 = vmatmul.mubr.bf16.vlgmr.msra.gmra.mrb[0].mxu0 %v810_v17 }
  0xf5   :  { %v606_v19 = vpop.f32.mrb[0].mxu0 }
  0xf6   :  { %v607_v20 = vpop.f32.mrb[1].mxu0 }
  0xf7   :  { %v608_v21 = vadd.f32 %v607_v20, %v606_v19  ;;  %v609_v22 = vpop.f32.mrb[2].mxu0 }
  0xf8   :  { %v610_v23 = vpop.f32.mrb[3].mxu0 }
  0xf9   :  { %v611_v24 = vadd.f32 %v610_v23, %v609_v22 }
  0xfb   :  { %v213_v25 = vpack.c.bf16 %v611_v24, %v608_v21 }
  0xfd   :  { %618 = vmatpush3.bf16.msra.mxu1 %v213_v25 }
 0x100   :  { %620 = vmatmul.mubr.msk.bf16.vlgmr.msra.gmra.mrb[0].mxu1 %vm214_vm1, %v212_v26 }
 0x101   :  { %625 = vmatprep.mubr.msk.bf16.mxu1 %vm273_vm2, %v659_v27  ;;  %v664_v27 = vld [vmem:[%s880_s7] sm:$0xff]   ;;  %s678_s7 = scalar_lea.vmem %s550_s10, 512 }
 0x102   :  { %p679_p0 = scmp.ne.s32.totalorder %s550_s10, %s678_s7  ;;  %p684_p2 = scmp.lt.s32.totalorder %s678_s7, %s678_s7 }
 0x104   :  { %p685_p3 = por %p684_p2, %p683_p1 }
 0x106   :  { %p686_p4 = pnand %p685_p3, %p679_p0 }
 0x1d3   :  { %v252_v28 = vpop.f32.mrb[0].mxu1 }
 0x1d4   :  { %v262_v29 = vpack.c.bf16 %v252_v28, %v252_v28  ;;  %v621_v30 = vpop.f32.mrb[1].mxu1  ;;  %v665_v28 = vld [vmem:[%s879_s6] sm:$0xff]  }
 0x1d5   :  { %v255_v31 = vpop.f32.mrb[2].mxu1 }
 0x1d6   :  { %v282_v32 = vsel %vm280_vm3, %v262_v29, 0  ;;  %v622_v33 = vpop.f32.mrb[3].mxu1  ;;  %633 = vmatprep.subr.msk.bf16.mxu1 %vm280_vm3, %v262_v29 }
 0x1d7   :  { %624 = vmatpush3.bf16.msra.mxu1 %v282_v32 }
 0x1d8   :  { %389 = vmatprep.subr.bf16.mxu1 %v663_v36 }
 0x1da   :  { %626 = vmatmul.mubr.msk.bf16.vlgmr.msra.gmra.mrb[4].mxu1 %vm273_vm2, %v660_v34 }
 0x1db   :  { %421 = vmatprep.mubr.bf16.mxu1 %v704_v37  ;;  %390 = vmatpush1.bf16.msra.mxu1 %v661_v35 }
 0x2ad   :  { %v627_v38 = vpop.f32.mrb[4].mxu1 }
 0x2ae   :  { %v318_v39 = vpop.f32.mrb[5].mxu1  ;;  %v338_v41 = vsel %vm214_vm1, %v627_v38, -inf }
 0x2af   :  { %v628_v40 = vpop.f32.mrb[6].mxu1  ;;  %v335_v44 = vsel %vm214_vm1, %v318_v39, -inf }
 0x2b0   :  { %v339_v42 = vsel %vm214_vm1, %v628_v40, -inf  ;;  %v321_v43 = vpop.f32.mrb[7].mxu1 }
 0x2b1   :  { %v340_v45 = vmax.f32 %v338_v41, %v339_v42  ;;  %v336_v46 = vsel %vm214_vm1, %v321_v43, -inf }
 0x2b2   :  { %v337_v47 = vmax.f32 %v335_v44, %v336_v46 }
 0x2b3   :  { %v343_v48 = vsub.f32 %v627_v38, %v340_v45  ;;  %v344_v49 = vsub.f32 %v628_v40, %v340_v45 }
 0x2b4   :  { %v341_v50 = vsub.f32 %v318_v39, %v337_v47  ;;  %v342_v51 = vsub.f32 %v321_v43, %v337_v47 }
 0x2b5   :  { %v349_v52 = vmul.f32 1.442695, %v343_v48  ;;  %v351_v53 = vmul.f32 1.442695, %v344_v49 }
 0x2b6   :  { %v345_v54 = vmul.f32 1.442695, %v341_v50  ;;  %v347_v55 = vmul.f32 1.442695, %v342_v51 }
 0x2b7   :  { %666 = vpow2.f32 %v349_v52 }
 0x2b8   :  { %668 = vpow2.f32 %v351_v53 }
 0x2b9   :  { %670 = vpow2.f32 %v345_v54 }
 0x2ba   :  { %672 = vpow2.f32 %v347_v55 }
 0x2c1   :  { %v667_v58 = vpop.eup %666 }
 0x2c2   :  { %v669_v59 = vpop.eup %668  ;;  %v356_v60 = vsel %vm214_vm1, %v667_v58, 0.0  ;;  %v363_v61 = vmul.f32 %v667_v58, %v333_v56 }
 0x2c3   :  { %v671_v62 = vpop.eup %670  ;;  %v357_v63 = vsel %vm214_vm1, %v669_v59, 0.0  ;;  %v364_v0 = vmul.f32 %v669_v59, %v334_v57 }
 0x2c4   :  { %v673_v1 = vpop.eup %672  ;;  %v358_v2 = vadd.f32 %v357_v63, %v356_v60  ;;  %v353_v3 = vsel %vm214_vm1, %v671_v62, 0.0  ;;  %v361_v4 = vmul.f32 %v671_v62, %v333_v56  ;;  %v368_v5 = vsel %vm214_vm1, %v363_v61, 0.0 }
 0x2c5   :  { %v369_v6 = vsel %vm214_vm1, %v364_v0, 0.0  ;;  %v354_v7 = vsel %vm214_vm1, %v673_v1, 0.0  ;;  %v362_v8 = vmul.f32 %v673_v1, %v334_v57 }
 0x2c6   :  { %674 = vrcp.f32 %v358_v2  ;;  %v355_v9 = vadd.f32 %v354_v7, %v353_v3  ;;  %v365_v10 = vsel %vm214_vm1, %v361_v4, 0.0  ;;  %v370_v11 = vadd.f32 %v369_v6, %v368_v5 }
 0x2c7   :  { %v366_v13 = vsel %vm214_vm1, %v362_v8, 0.0 }
 0x2c8   :  { %676 = vrcp.f32 %v355_v9  ;;  %v367_v14 = vadd.f32 %v366_v13, %v365_v10 }
 0x2d0   :  { %v675_v15 = vpop.eup %674 }
 0x2d1   :  { %v372_v16 = vmul.f32 %v675_v15, %v370_v11 }
 0x2d2   :  { %v677_v18 = vpop.eup %676 }
 0x2d3   :  { %v371_v19 = vmul.f32 %v677_v18, %v367_v14 }
 0x2d5   :  { %v373_v20 = vpack.c.bf16 %v372_v16, %v371_v19 }
 0x2d7   :  { %585 = vmatmul.mubr.msk.bf16.vlgmr.msra.gmra.mrb[8].mxu1 %vm214_vm1, %v373_v20 }
 0x2d8   :  { %478 = vmatprep.mubr.bf16.mxu1 %v704_v37 }
 0x3aa   :  { %v423_v21 = vpop.f32.mrb[8].mxu1 }
 0x3ab   :  { %v425_v22 = vpop.f32.mrb[9].mxu1 }
 0x3ac   :  { %v427_v23 = vpop.f32.mrb[10].mxu1 }
 0x3ad   :  { %v436_v24 = vpack.c.bf16 %v427_v23, %v423_v21  ;;  %v429_v25 = vpop.f32.mrb[11].mxu1 }
 0x3ae   :  { %v437_v26 = vpack.c.bf16 %v429_v25, %v425_v22 }
 0x3b0   :  { %446 = vmatprep.subr.bf16.mxu1 %v437_v26 }
 0x3b1   :  { %447 = vmatpush1.bf16.msra.mxu1 %v436_v24 }
 0x3b2   :  { %497 = vmatprep.subr.bf16.mxu1 %v792_v12 }
 0x3b4   :  { %587 = vmatmul.mubr.msk.bf16.vlgmr.msra.gmra.mrb[12].mxu1 %vm214_vm1, %v664_v27 }
 0x3b5   :  { %498 = vmatpush1.bf16.msra.mxu1 %v810_v17  ;;  %529 = vmatprep.mubr.bf16.mxu1 %v704_v37 }
 0x3c0   :  { %589 = vmatmul.mubr.msk.bf16.vlgmr.msra.gmra.mrb[12].mxu1 %vm214_vm1, %v665_v28 }
 0x493   :  { %v531_v29 = vpop.f32.mrb[12].mxu1 }
 0x494   :  { %540 = vst [vmem:[#allocation2] sm:$0xff] %v531_v29  ;;  %v533_v30 = vpop.f32.mrb[13].mxu1 }
 0x495   :  { %541 = vst [vmem:[#allocation2 + $0x8] sm:$0xff] %v533_v30  ;;  %v535_v12 = vpop.f32.mrb[14].mxu1 }
 0x496   :  { %542 = vst [vmem:[#allocation2 + $0x10] sm:$0xff] %v535_v12  ;;  %v537_v31 = vpop.f32.mrb[15].mxu1 }
 0x497   :  { %543 = vst [vmem:[#allocation2 + $0x18] sm:$0xff] %v537_v31 }
 0x498   :  { %689 = shalt.err (!%p686_p4)
}
 0x499   :  { %s690_s12 = scalar_lea.hbm %s881_s8, 512 }
 0x49a   :  { %p691_p5 = scmp.ne.s32.totalorder %s881_s8, %s690_s12  ;;  %p694_p6 = scmp.lt.u32.totalorder %s690_s12, %s881_s8 }
 0x49c   :  { %p696_p7 = pnand %p694_p6, %p691_p5 }
 0x49e   :  { %699 = shalt.err (!%p696_p7)
}
 0x49f   :  { %s706_s17 = smov 256   ;;  %s707_s18 = smov 16  }
 0x4a0   :  { %555 = dma.vmem_to_hbm [thread:$0]  %s550_s10, 512, %s881_s8, [#allocation3], %s706_s17, %s706_s17, %s707_s18  }
 0x4a1   :  { %700 = dma.done.wait [#allocation3], 512  }
 0x4a2   :  { %701 = vsyncadd [#allocation3], 4294966784 }
 0x4a3   :  { %559 = vsyncpa [#allocation3], 1 }

// kernel: tpu_custom_call.1
= control target key start
LH: loop header
LB: loop body
LE: loop exit
PB: predicated region body
PF: predicated region fallthrough
CT: control target
= control target key end

     0   :  { %s846_s0 = inlined_call_operand.vmem [shape: bf16[16,256], index: 0, kind: input, shape index: {}]   ;;  %s847_s1 = inlined_call_operand.vmem [shape: bf16[256,16], index: 1, kind: input, shape index: {}]   ;;  %s848_s2 = inlined_call_operand.vmem [shape: bf16[8,16], index: 2, kind: input, shape index: {}]   ;;  %s849_s3 = inlined_call_operand.vmem [shape: bf16[32,8], index: 3, kind: input, shape index: {}]   ;;  %s850_s4 = inlined_call_operand.vmem [shape: f32[2,8,16], index: 4, kind: input, shape index: {}]   ;;  %s851_s5 = inlined_call_operand.vmem [shape: bf16[16,256], index: 5, kind: input, shape index: {}]   ;;  %s852_s6 = inlined_call_operand.vmem [shape: bf16[16,16], index: 6, kind: input, shape index: {}]   ;;  %s853_s7 = inlined_call_operand.vmem [shape: bf16[16,16], index: 7, kind: input, shape index: {}]   ;;  %s854_s8 = inlined_call_operand.hbm [shape: f32[16,256], index: 8, kind: output, shape index: {}]  }
   0x1   :  { %v628_v0 = vld [vmem:[%s847_s1 + $0x40] sm:$0xff]   ;;  %v630_v2 = vld [vmem:[%s847_s1 + $0x48] sm:$0xff]   ;;  %v632_v4 = vld [vmem:[%s847_s1 + $0x50] sm:$0xff]  }
   0x2   :  { %v629_v1 = vld [vmem:[%s847_s1] sm:$0xff]   ;;  %578 = vmatprep.subr.bf16.mxu0 %v628_v0  ;;  %v631_v3 = vld [vmem:[%s847_s1 + $0x8] sm:$0xff]   ;;  %v633_v5 = vld [vmem:[%s847_s1 + $0x10] sm:$0xff]  }
   0x3   :  { %579 = vmatpush3.bf16.msra.mxu0 %v629_v1  ;;  %v634_v6 = vld [vmem:[%s847_s1 + $0x58] sm:$0xff]   ;;  %v636_v8 = vld [vmem:[%s847_s1 + $0x60] sm:$0xff]   ;;  %v638_v10 = vld [vmem:[%s847_s1 + $0x68] sm:$0xff]  }
   0x4   :  { %580 = vmatprep.subr.bf16.mxu0 %v630_v2  ;;  %v635_v7 = vld [vmem:[%s847_s1 + $0x18] sm:$0xff]   ;;  %v637_v9 = vld [vmem:[%s847_s1 + $0x20] sm:$0xff]   ;;  %v639_v11 = vld [vmem:[%s847_s1 + $0x28] sm:$0xff]  }
   0x5   :  { %v780_v12 = vld [vmem:[%s846_s0 + $0x4] ss:$8 sps:$4 sm:$0xff]   ;;  %v640_v13 = vld [vmem:[%s847_s1 + $0x70] sm:$0xff]  }
   0x6   :  { %203 = vmatprep.mubr.bf16.mxu0 %v780_v12 }
   0x7   :  { %581 = vmatpush3.bf16.msra.mxu0 %v631_v3 }
   0x8   :  { %582 = vmatprep.subr.bf16.mxu0 %v632_v4 }
   0xb   :  { %583 = vmatpush3.bf16.msra.mxu0 %v633_v5 }
   0xc   :  { %584 = vmatprep.subr.bf16.mxu0 %v634_v6 }
   0xf   :  { %585 = vmatpush3.bf16.msra.mxu0 %v635_v7 }
  0x10   :  { %586 = vmatprep.subr.bf16.mxu0 %v636_v8 }
  0x13   :  { %587 = vmatpush3.bf16.msra.mxu0 %v637_v9 }
  0x14   :  { %588 = vmatprep.subr.bf16.mxu0 %v638_v10 }
  0x15   :  { %13 = vsyncpa [#allocation3], 0  ;;  %v641_v14 = vld [vmem:[%s847_s1 + $0x30] sm:$0xff]   ;;  %v642_v15 = vld [vmem:[%s847_s1 + $0x78] sm:$0xff]   ;;  %v690_v18 = vmov 0.0   ;;  %vm691_vm0 = vmmov 0  }
  0x16   :  { %v643_v16 = vld [vmem:[%s847_s1 + $0x38] sm:$0xff]   ;;  %v798_v17 = vld [vmem:[%s846_s0] ss:$8 sps:$4 sm:$0xff]   ;;  %605 = vmatprep.subr.bf16.mxu1 %v690_v18  ;;  %607 = vmatprep.mubr.msk.bf16.mxu1 %vm691_vm0, %v690_v18  ;;  %vm214_vm1 = vcmask 130048   ;;  %vm273_vm2 = vcmask 64512   ;;  %vm280_vm3 = vcmask 1043456  }
  0x17   :  { %589 = vmatpush3.bf16.msra.mxu0 %v639_v11  ;;  %v212_v26 = vld [vmem:[%s848_s2] sm:$0xf]  ;;  %v648_v34 = vld [vmem:[%s849_s3 + $0x8] sm:$0xff]   ;;  %v692_v37 = vmov 0   ;;  %s693_s9 = smov [#allocation2]  }
  0x18   :  { %590 = vmatprep.subr.bf16.mxu0 %v640_v13  ;;  %v647_v27 = vld [vmem:[%s849_s3] sm:$0xff]   ;;  %v334_v53 = vld [vmem:[%s850_s4 + $0x8] sm:$0xff]  ;;  %s537_s10 = sshll.u32 %s693_s9, 4  ;;  %s538_s10 = int_to_ptr.vmem [resolvable:$true] %s537_s10 }
  0x19   :  { %v649_v35 = vld [vmem:[%s851_s5] ss:$8 sps:$4 sm:$0xff]   ;;  %v651_v36 = vld [vmem:[%s851_s5 + $0x4] ss:$8 sps:$4 sm:$0xff]   ;;  %p671_p1 = scmp.lt.s32.totalorder %s538_s10, %s538_s10 }
  0x1a   :  { %v333_v52 = vld [vmem:[%s850_s4] sm:$0xff] }
  0x1b   :  { %591 = vmatpush3.bf16.msra.mxu0 %v641_v14  ;;  %v652_v14 = vld [vmem:[%s853_s7] sm:$0xff]   ;;  %s666_s7 = scalar_lea.vmem %s538_s10, 512 }
  0x1c   :  { %592 = vmatprep.subr.bf16.mxu0 %v642_v15  ;;  %v653_v15 = vld [vmem:[%s852_s6] sm:$0xff]   ;;  %p667_p0 = scmp.ne.s32.totalorder %s538_s10, %s666_s7  ;;  %p672_p2 = scmp.lt.s32.totalorder %s666_s7, %s666_s7 }
  0x1e   :  { %p673_p3 = por %p672_p2, %p671_p1 }
  0x1f   :  { %593 = vmatpush3.bf16.msra.mxu0 %v643_v16 }
  0x20   :  { %p674_p4 = pnand %p673_p3, %p667_p0 }
  0x22   :  { %204 = vmatmul.mubr.bf16.vlgmr.msra.gmra.mrb[0].mxu0 %v798_v17 }
  0xf5   :  { %v594_v19 = vpop.f32.mrb[0].mxu0 }
  0xf6   :  { %v595_v20 = vpop.f32.mrb[1].mxu0 }
  0xf7   :  { %v596_v21 = vadd.f32 %v595_v20, %v594_v19  ;;  %v597_v22 = vpop.f32.mrb[2].mxu0 }
  0xf8   :  { %v598_v23 = vpop.f32.mrb[3].mxu0 }
  0xf9   :  { %v599_v24 = vadd.f32 %v598_v23, %v597_v22 }
  0xfb   :  { %v213_v25 = vpack.c.bf16 %v599_v24, %v596_v21 }
  0xfd   :  { %606 = vmatpush3.bf16.msra.mxu1 %v213_v25 }
 0x100   :  { %608 = vmatmul.mubr.msk.bf16.vlgmr.msra.gmra.mrb[0].mxu1 %vm214_vm1, %v212_v26 }
 0x101   :  { %613 = vmatprep.mubr.msk.bf16.mxu1 %vm273_vm2, %v647_v27 }
 0x1d3   :  { %v252_v28 = vpop.f32.mrb[0].mxu1 }
 0x1d4   :  { %v262_v29 = vpack.c.bf16 %v252_v28, %v252_v28  ;;  %v609_v30 = vpop.f32.mrb[1].mxu1 }
 0x1d5   :  { %v255_v31 = vpop.f32.mrb[2].mxu1 }
 0x1d6   :  { %v282_v32 = vsel %vm280_vm3, %v262_v29, 0  ;;  %v610_v33 = vpop.f32.mrb[3].mxu1  ;;  %621 = vmatprep.subr.msk.bf16.mxu1 %vm280_vm3, %v262_v29 }
 0x1d7   :  { %612 = vmatpush3.bf16.msra.mxu1 %v282_v32 }
 0x1d8   :  { %377 = vmatprep.subr.bf16.mxu1 %v651_v36 }
 0x1da   :  { %614 = vmatmul.mubr.msk.bf16.vlgmr.msra.gmra.mrb[4].mxu1 %vm273_vm2, %v648_v34 }
 0x1db   :  { %409 = vmatprep.mubr.bf16.mxu1 %v692_v37  ;;  %378 = vmatpush1.bf16.msra.mxu1 %v649_v35 }
 0x2ad   :  { %v615_v38 = vpop.f32.mrb[4].mxu1 }
 0x2ae   :  { %v318_v39 = vpop.f32.mrb[5].mxu1 }
 0x2af   :  { %v616_v40 = vpop.f32.mrb[6].mxu1 }
 0x2b0   :  { %v336_v41 = vmax.f32 %v615_v38, %v616_v40  ;;  %v321_v42 = vpop.f32.mrb[7].mxu1 }
 0x2b1   :  { %v335_v43 = vmax.f32 %v318_v39, %v321_v42 }
 0x2b2   :  { %v338_v44 = vsub.f32 %v615_v38, %v336_v41  ;;  %v344_v45 = vsub.f32 %v616_v40, %v336_v41 }
 0x2b3   :  { %v337_v46 = vsub.f32 %v318_v39, %v335_v43  ;;  %v343_v47 = vsub.f32 %v321_v42, %v335_v43 }
 0x2b4   :  { %v341_v48 = vmul.f32 1.442695, %v338_v44  ;;  %v347_v49 = vmul.f32 1.442695, %v344_v45 }
 0x2b5   :  { %v339_v50 = vmul.f32 1.442695, %v337_v46  ;;  %v345_v51 = vmul.f32 1.442695, %v343_v47 }
 0x2b6   :  { %654 = vpow2.f32 %v341_v48 }
 0x2b7   :  { %656 = vpow2.f32 %v347_v49 }
 0x2b8   :  { %658 = vpow2.f32 %v339_v50 }
 0x2b9   :  { %660 = vpow2.f32 %v345_v51 }
 0x2c0   :  { %v655_v54 = vpop.eup %654 }
 0x2c1   :  { %v657_v55 = vpop.eup %656  ;;  %v354_v56 = vmul.f32 %v655_v54, %v333_v52 }
 0x2c2   :  { %v659_v57 = vpop.eup %658  ;;  %v350_v58 = vadd.f32 %v657_v55, %v655_v54  ;;  %v356_v59 = vmul.f32 %v657_v55, %v334_v53 }
 0x2c3   :  { %v661_v60 = vpop.eup %660  ;;  %v353_v61 = vmul.f32 %v659_v57, %v333_v52 }
 0x2c4   :  { %662 = vrcp.f32 %v350_v58  ;;  %v358_v62 = vadd.f32 %v356_v59, %v354_v56  ;;  %v349_v63 = vadd.f32 %v661_v60, %v659_v57  ;;  %v355_v0 = vmul.f32 %v661_v60, %v334_v53 }
 0x2c6   :  { %664 = vrcp.f32 %v349_v63  ;;  %v357_v1 = vadd.f32 %v355_v0, %v353_v61 }
 0x2ce   :  { %v663_v2 = vpop.eup %662 }
 0x2cf   :  { %v360_v3 = vmul.f32 %v663_v2, %v358_v62 }
 0x2d0   :  { %v665_v4 = vpop.eup %664 }
 0x2d1   :  { %v359_v5 = vmul.f32 %v665_v4, %v357_v1 }
 0x2d3   :  { %v361_v6 = vpack.c.bf16 %v360_v3, %v359_v5 }
 0x2d5   :  { %573 = vmatmul.mubr.msk.bf16.vlgmr.msra.gmra.mrb[8].mxu1 %vm214_vm1, %v361_v6 }
 0x2d6   :  { %466 = vmatprep.mubr.bf16.mxu1 %v692_v37 }
 0x3a8   :  { %v411_v7 = vpop.f32.mrb[8].mxu1 }
 0x3a9   :  { %v413_v8 = vpop.f32.mrb[9].mxu1 }
 0x3aa   :  { %v415_v9 = vpop.f32.mrb[10].mxu1 }
 0x3ab   :  { %v424_v10 = vpack.c.bf16 %v415_v9, %v411_v7  ;;  %v417_v11 = vpop.f32.mrb[11].mxu1 }
 0x3ac   :  { %v425_v13 = vpack.c.bf16 %v417_v11, %v413_v8 }
 0x3ae   :  { %434 = vmatprep.subr.bf16.mxu1 %v425_v13 }
 0x3af   :  { %435 = vmatpush1.bf16.msra.mxu1 %v424_v10 }
 0x3b0   :  { %485 = vmatprep.subr.bf16.mxu1 %v780_v12 }
 0x3b2   :  { %575 = vmatmul.mubr.msk.bf16.vlgmr.msra.gmra.mrb[12].mxu1 %vm214_vm1, %v652_v14 }
 0x3b3   :  { %486 = vmatpush1.bf16.msra.mxu1 %v798_v17  ;;  %517 = vmatprep.mubr.bf16.mxu1 %v692_v37 }
 0x3be   :  { %577 = vmatmul.mubr.msk.bf16.vlgmr.msra.gmra.mrb[12].mxu1 %vm214_vm1, %v653_v15 }
 0x491   :  { %v519_v16 = vpop.f32.mrb[12].mxu1 }
 0x492   :  { %528 = vst [vmem:[#allocation2] sm:$0xff] %v519_v16  ;;  %v521_v18 = vpop.f32.mrb[13].mxu1 }
 0x493   :  { %529 = vst [vmem:[#allocation2 + $0x8] sm:$0xff] %v521_v18  ;;  %v523_v19 = vpop.f32.mrb[14].mxu1 }
 0x494   :  { %530 = vst [vmem:[#allocation2 + $0x10] sm:$0xff] %v523_v19  ;;  %v525_v12 = vpop.f32.mrb[15].mxu1 }
 0x495   :  { %531 = vst [vmem:[#allocation2 + $0x18] sm:$0xff] %v525_v12 }
 0x496   :  { %677 = shalt.err (!%p674_p4)
}
 0x497   :  { %s678_s12 = scalar_lea.hbm %s854_s8, 512 }
 0x498   :  { %p679_p5 = scmp.ne.s32.totalorder %s854_s8, %s678_s12  ;;  %p682_p6 = scmp.lt.u32.totalorder %s678_s12, %s854_s8 }
 0x49a   :  { %p684_p7 = pnand %p682_p6, %p679_p5 }
 0x49c   :  { %687 = shalt.err (!%p684_p7)
}
 0x49d   :  { %s694_s17 = smov 256   ;;  %s695_s18 = smov 16  }
 0x49e   :  { %543 = dma.vmem_to_hbm [thread:$0]  %s538_s10, 512, %s854_s8, [#allocation3], %s694_s17, %s694_s17, %s695_s18  }
 0x49f   :  { %688 = dma.done.wait [#allocation3], 512  }
 0x4a0   :  { %689 = vsyncadd [#allocation3], 4294966784 }
 0x4a1   :  { %547 = vsyncpa [#allocation3], 1 }

</bundles_post_ra>
